<compile_context>
chip_gen: v7x
topology: tpu7x:2x2x1
jax: 0.10.0
libtpu: 0.0.40
codegen_flags: <defaults>
</compile_context>

<pallas_src>
import functools

import jax
import jax.numpy as jnp
from jax.experimental import pallas as pl
from jax.experimental.pallas import tpu as pltpu

LN_EPS = 1e-5  # PyTorch LayerNorm default eps


# ----------------------------------------------------------------------------
# Pallas kernels
# ----------------------------------------------------------------------------

def _layernorm(z, g, b):
    mean = jnp.mean(z, axis=-1, keepdims=True)
    zc = z - mean
    var = jnp.mean(zc * zc, axis=-1, keepdims=True)
    return zc * jax.lax.rsqrt(var + LN_EPS) * g + b


def _embed_kernel(x_ref, w_ref, b_ref, pos_ref, o_ref):
    # (1, S, SD) @ (SD, E) + bias + positional embedding, one batch element/step.
    o_ref[0] = (
        jnp.dot(x_ref[0], w_ref[...], preferred_element_type=jnp.float32)
        + b_ref[...]
        + pos_ref[...]
    )


def _attention_block_kernel(x_ref, wq_ref, wk_ref, wv_ref, bq_ref, bk_ref,
                            bv_ref, wo_ref, bo_ref, g_ref, beta_ref, o_ref,
                            *, nhead, scale):
    # One batch element per grid step; the whole MHA sub-layer (QKV projection,
    # softmax attention for every head, output projection, residual add and
    # LayerNorm) runs in a single kernel with no HBM round trips.
    x = x_ref[0]                                   # (S, E)
    s_len, e = x.shape
    acc = jnp.zeros((s_len, e), jnp.float32)
    for h in range(nhead):                         # static, unrolled head loop
        q = jnp.dot(x, wq_ref[h], preferred_element_type=jnp.float32) + bq_ref[h]
        k = jnp.dot(x, wk_ref[h], preferred_element_type=jnp.float32) + bk_ref[h]
        v = jnp.dot(x, wv_ref[h], preferred_element_type=jnp.float32) + bv_ref[h]
        s = jax.lax.dot_general(q, k, (((1,), (1,)), ((), ())),
                                preferred_element_type=jnp.float32) * scale
        m = jnp.max(s, axis=-1, keepdims=True)
        p = jnp.exp(s - m)
        # softmax denominator via EUP approx reciprocal (frees VALU slots)
        p = p * pl.reciprocal(jnp.sum(p, axis=-1, keepdims=True), approx=True)
        o_h = jnp.dot(p, v, preferred_element_type=jnp.float32)       # (S, dh)
        # concat_h(o_h) @ Wo  ==  sum_h o_h @ Wo[h]  -> avoids lane concat/split
        acc = acc + jnp.dot(o_h, wo_ref[h], preferred_element_type=jnp.float32)
    attn = acc + bo_ref[...]
    o_ref[0] = _layernorm(x + attn, g_ref[...], beta_ref[...])


def _ffn_block_kernel(x_ref, w1_ref, b1_ref, w2_ref, b2_ref, g_ref, beta_ref,
                      o_ref):
    # Fused linear -> ReLU -> linear -> residual add -> LayerNorm on a row tile.
    x = x_ref[...]
    h = jnp.dot(x, w1_ref[...], preferred_element_type=jnp.float32) + b1_ref[...]
    h = jnp.maximum(h, 0.0)                        # ReLU (PyTorch default)
    f = jnp.dot(h, w2_ref[...], preferred_element_type=jnp.float32) + b2_ref[...]
    o_ref[...] = _layernorm(x + f, g_ref[...], beta_ref[...])


def _heads_kernel(x_ref, pw_ref, pb_ref, vw_ref, vb_ref, pol_ref, val_ref):
    x = x_ref[...]
    pol_ref[...] = (jnp.dot(x, pw_ref[...], preferred_element_type=jnp.float32)
                    + pb_ref[...])
    val_ref[...] = (jnp.dot(x, vw_ref[...], preferred_element_type=jnp.float32)
                    + vb_ref[...])


# ----------------------------------------------------------------------------
# pallas_call wrappers
# ----------------------------------------------------------------------------

def _full_spec(shape):
    """BlockSpec that always selects the whole (small, weight-like) array."""
    return pl.BlockSpec(shape, lambda *_: (0,) * len(shape))


def embed(state_seq, w, bias, pos):
    """Fused state embedding + positional add.  (B,S,SD) -> (B,S,E)."""
    b, s, sd = state_seq.shape
    e = w.shape[1]
    return pl.pallas_call(
        _embed_kernel,
        out_shape=jax.ShapeDtypeStruct((b, s, e), jnp.float32),
        grid=(b,),
        in_specs=[
            pl.BlockSpec((1, s, sd), lambda i: (i, 0, 0)),
            _full_spec((sd, e)),
            _full_spec((1, e)),
            _full_spec((s, e)),
        ],
        out_specs=pl.BlockSpec((1, s, e), lambda i: (i, 0, 0)),
        compiler_params=pltpu.CompilerParams(dimension_semantics=("parallel",)),
    )(state_seq, w, bias.reshape(1, e), pos)


def attention_block(x, wq, wk, wv, bq, bk, bv, wo, bo, gamma, beta,
                    nhead, head_dim):
    """Fused MHA sub-layer (incl. residual + LayerNorm).  x: (B,S,E)."""
    b, s, e = x.shape
    dh = head_dim
    kern = functools.partial(_attention_block_kernel, nhead=nhead,
                             scale=1.0 / (head_dim ** 0.5))
    return pl.pallas_call(
        kern,
        out_shape=jax.ShapeDtypeStruct((b, s, e), jnp.float32),
        grid=(b,),
        in_specs=[
            pl.BlockSpec((1, s, e), lambda i: (i, 0, 0)),
            _full_spec((nhead, e, dh)), _full_spec((nhead, e, dh)),
            _full_spec((nhead, e, dh)),
            _full_spec((nhead, 1, dh)), _full_spec((nhead, 1, dh)),
            _full_spec((nhead, 1, dh)),
            _full_spec((nhead, dh, e)), _full_spec((1, e)),
            _full_spec((1, e)), _full_spec((1, e)),
        ],
        out_specs=pl.BlockSpec((1, s, e), lambda i: (i, 0, 0)),
        compiler_params=pltpu.CompilerParams(dimension_semantics=("parallel",)),
    )(x, wq, wk, wv, bq, bk, bv, wo, bo.reshape(1, e),
      gamma.reshape(1, e), beta.reshape(1, e))


def _pick_row_tile(n):
    # Row tile for the FFN block: big enough to amortize per-step overhead,
    # small enough to keep the (TM, FF) intermediate comfortably inside VMEM
    # (sized for the 64 MiB v7x budget; v5e/v6e have more headroom).
    if n <= 512:
        return n
    for tm in (512, 256, 128, 64, 32, 16, 8):
        if n % tm == 0:
            return tm
    return n


def ffn_block(x, w1, b1, w2, b2, gamma, beta):
    """Fused FFN sub-layer (incl. residual + LayerNorm), row-tiled.  x: (N,E)."""
    n, e = x.shape
    f = w1.shape[1]
    tm = _pick_row_tile(n)
    return pl.pallas_call(
        _ffn_block_kernel,
        out_shape=jax.ShapeDtypeStruct((n, e), jnp.float32),
        grid=(n // tm,),
        in_specs=[
            pl.BlockSpec((tm, e), lambda i: (i, 0)),
            _full_spec((e, f)), _full_spec((1, f)),
            _full_spec((f, e)), _full_spec((1, e)),
            _full_spec((1, e)), _full_spec((1, e)),
        ],
        out_specs=pl.BlockSpec((tm, e), lambda i: (i, 0)),
        compiler_params=pltpu.CompilerParams(dimension_semantics=("parallel",)),
    )(x, w1, b1.reshape(1, f), w2, b2.reshape(1, e),
      gamma.reshape(1, e), beta.reshape(1, e))


def heads(x, pw, pb, vw, vb):
    """Fused policy + value heads on the last hidden state.  x: (B,E)."""
    b, e = x.shape
    a = pw.shape[1]
    vmem = pl.BlockSpec(memory_space=pltpu.MemorySpace.VMEM)
    return pl.pallas_call(
        _heads_kernel,
        out_shape=(jax.ShapeDtypeStruct((b, a), jnp.float32),
                   jax.ShapeDtypeStruct((b, 1), jnp.float32)),
        in_specs=[vmem] * 5,
        out_specs=(vmem, vmem),
    )(x, pw, pb.reshape(1, a), vw, vb.reshape(1, 1))


# ----------------------------------------------------------------------------
# Model: parameters + forward
# ----------------------------------------------------------------------------

def init_params(key, state_dim, emb_dim, nhead, num_layers, dim_feedforward,
                num_actions, max_seq_len):
    def dense(k, din, dout, scale=0.02):
        kw, _ = jax.random.split(k)
        return (scale * jax.random.normal(kw, (din, dout), jnp.float32),
                jnp.zeros((dout,), jnp.float32))

    keys = jax.random.split(key, 4 + num_layers)
    emb_w, emb_b = dense(keys[0], state_dim, emb_dim)
    pos_emb = 0.02 * jax.random.normal(keys[1], (max_seq_len, emb_dim), jnp.float32)
    pol_w, pol_b = dense(keys[2], emb_dim, num_actions)
    val_w, val_b = dense(keys[3], emb_dim, 1)

    layers = []
    for li in range(num_layers):
        lk = jax.random.split(keys[4 + li], 4)
        in_proj_w, in_proj_b = dense(lk[0], emb_dim, 3 * emb_dim)
        out_proj_w, out_proj_b = dense(lk[1], emb_dim, emb_dim)
        w1, b1 = dense(lk[2], emb_dim, dim_feedforward)
        w2, b2 = dense(lk[3], dim_feedforward, emb_dim)
        layers.append(dict(
            in_proj_w=in_proj_w, in_proj_b=in_proj_b,
            out_proj_w=out_proj_w, out_proj_b=out_proj_b,
            ln1_g=jnp.ones((emb_dim,), jnp.float32),
            ln1_b=jnp.zeros((emb_dim,), jnp.float32),
            w1=w1, b1=b1, w2=w2, b2=b2,
            ln2_g=jnp.ones((emb_dim,), jnp.float32),
            ln2_b=jnp.zeros((emb_dim,), jnp.float32),
        ))

    return dict(
        emb_dim=emb_dim, nhead=nhead,
        emb_w=emb_w, emb_b=emb_b, pos_emb=pos_emb,
        layers=layers,
        pol_w=pol_w, pol_b=pol_b, val_w=val_w, val_b=val_b,
    )


def spp2d_transformer_forward(params, state_seq):
    """state_seq: (B, S, state_dim) -> (policy_logits (B, A), state_value (B, 1))"""
    b, s, _ = state_seq.shape
    e = params["emb_dim"]
    nh = params["nhead"]
    dh = e // nh

    # fused: state embedding + positional embedding
    x = embed(state_seq, params["emb_w"], params["emb_b"], params["pos_emb"][:s])

    for layer in params["layers"]:
        w_in, b_in = layer["in_proj_w"], layer["in_proj_b"]
        # per-head weight slabs (tiny, weight-only reshapes done once outside
        # the kernels): (H, E, dh) for q/k/v, (H, dh, E) for the out-projection.
        wq, wk, wv = (w_in[:, i * e:(i + 1) * e]
                      .reshape(e, nh, dh).transpose(1, 0, 2) for i in range(3))
        bq, bk, bv = (b_in[i * e:(i + 1) * e].reshape(nh, 1, dh) for i in range(3))
        wo = layer["out_proj_w"].reshape(nh, dh, e)

        # fused MHA sub-layer (post-norm)
        x = attention_block(x, wq, wk, wv, bq, bk, bv, wo, layer["out_proj_b"],
                            layer["ln1_g"], layer["ln1_b"], nh, dh)

        # fused FFN sub-layer (post-norm), row-tiled over B*S
        xf = ffn_block(x.reshape(b * s, e), layer["w1"], layer["b1"],
                       layer["w2"], layer["b2"], layer["ln2_g"], layer["ln2_b"])
        x = xf.reshape(b, s, e)

    last_hidden = x[:, -1, :]                       # (B, E)
    return heads(last_hidden, params["pol_w"], params["pol_b"],
                 params["val_w"], params["val_b"])


# ----------------------------------------------------------------------------
# Pure-JAX reference (same math) for correctness check
# ----------------------------------------------------------------------------

def ref_forward(params, state_seq):
    b, s, _ = state_seq.shape
    e = params["emb_dim"]
    nh = params["nhead"]
    dh = e // nh

    def lin(x, w, bb):
        return x @ w + bb

    def lnorm(z, g, bt):
        mu = jnp.mean(z, -1, keepdims=True)
        zc = z - mu
        var = jnp.mean(zc * zc, -1, keepdims=True)
        return zc * jax.lax.rsqrt(var + LN_EPS) * g + bt

    x = lin(state_seq, params["emb_w"], params["emb_b"]) + params["pos_emb"][:s][None]
    for layer in params["layers"]:
        qkv = lin(x, layer["in_proj_w"], layer["in_proj_b"])
        q, k, v = jnp.split(qkv, 3, axis=-1)

        def sh(t):
            return t.reshape(b, s, nh, dh).transpose(0, 2, 1, 3)
        q, k, v = sh(q), sh(k), sh(v)
        scores = jnp.einsum("bhqd,bhkd->bhqk", q, k) / (dh ** 0.5)
        p = jax.nn.softmax(scores, axis=-1)
        a = jnp.einsum("bhqk,bhkd->bhqd", p, v).transpose(0, 2, 1, 3).reshape(b, s, e)
        a = lin(a, layer["out_proj_w"], layer["out_proj_b"])
        x = lnorm(x + a, layer["ln1_g"], layer["ln1_b"])
        f = lin(jnp.maximum(lin(x, layer["w1"], layer["b1"]), 0.0),
                layer["w2"], layer["b2"])
        x = lnorm(x + f, layer["ln2_g"], layer["ln2_b"])
    last = x[:, -1, :]
    return (lin(last, params["pol_w"], params["pol_b"]),
            lin(last, params["val_w"], params["val_b"]))


# ----------------------------------------------------------------------------
# Main
# ----------------------------------------------------------------------------

if __name__ == "__main__":
    # small, forward-consistent shapes
    B, S = 2, 8
    STATE_DIM, EMB_DIM, NHEAD = 4, 32, 4
    NUM_LAYERS, DIM_FF = 2, 64
    NUM_ACTIONS, MAX_SEQ_LEN = 6, 16

    key = jax.random.PRNGKey(0)
    pkey, xkey = jax.random.split(key)
    params = init_params(pkey, STATE_DIM, EMB_DIM, NHEAD, NUM_LAYERS,
                         DIM_FF, NUM_ACTIONS, MAX_SEQ_LEN)
    state_seq = jax.random.normal(xkey, (B, S, STATE_DIM), jnp.float32)

    policy_logits, state_value = spp2d_transformer_forward(params, state_seq)
    jax.block_until_ready((policy_logits, state_value))

    # sanity-check against a pure-JAX reference (tolerance accounts for the
    # approx softmax reciprocal and MXU-pass matmul precision differences)
    ref_pol, ref_val = ref_forward(params, state_seq)
    assert policy_logits.shape == (B, NUM_ACTIONS)
    assert state_value.shape == (B, 1)
    assert jnp.allclose(policy_logits, ref_pol, rtol=5e-2, atol=5e-3)
    assert jnp.allclose(state_value, ref_val, rtol=5e-2, atol=5e-3)

    print("KERNEL_OK")
</pallas_src>

<mosaic_0001>
module attributes {stable_mosaic.version = 11 : i64} {
  func.func @_embed_kernel(%arg0: i32, %arg1: memref<1x8x4xf32, #tpu.memory_space<vmem>>, %arg2: memref<4x32xf32, #tpu.memory_space<vmem>>, %arg3: memref<1x32xf32, #tpu.memory_space<vmem>>, %arg4: memref<8x32xf32, #tpu.memory_space<vmem>>, %arg5: memref<1x8x32xf32, #tpu.memory_space<vmem>>) attributes {dimension_semantics = [#tpu.dimension_semantics<parallel>], iteration_bounds = array<i64: 2>, scalar_prefetch = 0 : i64, scratch_operands = 0 : i64, tpu.core_type = #tpu.core_type<tc>, window_params = [{transform_indices = @transform_0, window_bounds = array<i64: 1, 8, 4>}, {pipeline_mode = #tpu.pipeline_mode<synchronous>, transform_indices = @transform_1, window_bounds = array<i64: 4, 32>}, {pipeline_mode = #tpu.pipeline_mode<synchronous>, transform_indices = @transform_2, window_bounds = array<i64: 1, 32>}, {pipeline_mode = #tpu.pipeline_mode<synchronous>, transform_indices = @transform_3, window_bounds = array<i64: 8, 32>}, {transform_indices = @transform_4, window_bounds = array<i64: 1, 8, 32>}]} {
    %c0 = arith.constant 0 : index
    %c0_0 = arith.constant 0 : index
    %c0_1 = arith.constant 0 : index
    %0 = vector.load %arg1[%c0, %c0_0, %c0_1] : memref<1x8x4xf32, #tpu.memory_space<vmem>>, vector<1x8x4xf32>
    %1 = vector.shape_cast %0 : vector<1x8x4xf32> to vector<8x4xf32>
    %c0_2 = arith.constant 0 : index
    %c0_3 = arith.constant 0 : index
    %2 = vector.load %arg2[%c0_2, %c0_3] : memref<4x32xf32, #tpu.memory_space<vmem>>, vector<4x32xf32>
    %cst = arith.constant dense<0.000000e+00> : vector<8x32xf32>
    %3 = tpu.matmul %1, %2, %cst {dimension_numbers = #tpu.dot_dimension_numbers<[1], [0], [0], [1], [0, 0, 1, 1], [], []>} : vector<8x4xf32>, vector<4x32xf32>, vector<8x32xf32> -> vector<8x32xf32>
    %c0_4 = arith.constant 0 : index
    %c0_5 = arith.constant 0 : index
    %4 = vector.load %arg3[%c0_4, %c0_5] : memref<1x32xf32, #tpu.memory_space<vmem>>, vector<1x32xf32>
    %5 = vector.broadcast %4 : vector<1x32xf32> to vector<8x32xf32>
    %6 = arith.addf %3, %5 : vector<8x32xf32>
    %c0_6 = arith.constant 0 : index
    %c0_7 = arith.constant 0 : index
    %7 = vector.load %arg4[%c0_6, %c0_7] : memref<8x32xf32, #tpu.memory_space<vmem>>, vector<8x32xf32>
    %8 = arith.addf %6, %7 : vector<8x32xf32>
    %c0_8 = arith.constant 0 : index
    %c0_9 = arith.constant 0 : index
    %c0_10 = arith.constant 0 : index
    %9 = vector.load %arg5[%c0_8, %c0_9, %c0_10] : memref<1x8x32xf32, #tpu.memory_space<vmem>>, vector<1x8x32xf32>
    %10 = vector.shape_cast %9 : vector<1x8x32xf32> to vector<8x32xf32>
    %11 = vector.shape_cast %8 : vector<8x32xf32> to vector<1x8x32xf32>
    tpu.vector_store %arg5[%c0_8, %c0_9, %c0_10], %11 {strides = array<i32>} : memref<1x8x32xf32, #tpu.memory_space<vmem>>, vector<1x8x32xf32>,
    return
  }
  func.func @transform_0(%arg0: i32) -> (i32, i32, i32) {
    %c0_i32 = arith.constant 0 : i32
    %c0_i32_0 = arith.constant 0 : i32
    %c0_i32_1 = arith.constant 0 : i32
    return %arg0, %c0_i32, %c0_i32_0 : i32, i32, i32
  }
  func.func @transform_1(%arg0: i32) -> (i32, i32) {
    %c0_i32 = arith.constant 0 : i32
    %c0_i32_0 = arith.constant 0 : i32
    %c0_i32_1 = arith.constant 0 : i32
    return %c0_i32, %c0_i32_0 : i32, i32
  }
  func.func @transform_2(%arg0: i32) -> (i32, i32) {
    %c0_i32 = arith.constant 0 : i32
    %c0_i32_0 = arith.constant 0 : i32
    %c0_i32_1 = arith.constant 0 : i32
    return %c0_i32, %c0_i32_0 : i32, i32
  }
  func.func @transform_3(%arg0: i32) -> (i32, i32) {
    %c0_i32 = arith.constant 0 : i32
    %c0_i32_0 = arith.constant 0 : i32
    %c0_i32_1 = arith.constant 0 : i32
    return %c0_i32, %c0_i32_0 : i32, i32
  }
  func.func @transform_4(%arg0: i32) -> (i32, i32, i32) {
    %c0_i32 = arith.constant 0 : i32
    %c0_i32_0 = arith.constant 0 : i32
    %c0_i32_1 = arith.constant 0 : i32
    return %arg0, %c0_i32, %c0_i32_0 : i32, i32, i32
  }
}

</mosaic_0001>

<bundles_post_ra>
// kernel: tpu_custom_call.1
= control target key start
LH: loop header
LB: loop body
LE: loop exit
PB: predicated region body
PF: predicated region fallthrough
CT: control target
= control target key end

     0   :  { %9 = vsyncpa [#allocation3], 0  ;;  %s619_s0 = inlined_call_operand.vmem [shape: f32[2,8,4], index: 0, kind: input, shape index: {}]   ;;  %s620_s1 = inlined_call_operand.vmem [shape: f32[4,32], index: 1, kind: input, shape index: {}]   ;;  %s621_s2 = inlined_call_operand.vmem [shape: f32[1,32], index: 2, kind: input, shape index: {}]   ;;  %s622_s3 = inlined_call_operand.vmem [shape: f32[8,32], index: 3, kind: input, shape index: {}]   ;;  %s623_s4 = inlined_call_operand.hbm [shape: f32[2,8,32], index: 4, kind: output, shape index: {}]  }
   0x1   :  { %11 = vsyncpa [#allocation3 + $0x1], 0  ;;  %s510_s15 = smov 0   ;;  %s512_s16 = smov 0  }
   0x2   :  { %s514_s17 = smov 0   ;;  %s516_s18 = smov 0  }
   0x3 LB: > { %s531_s19 = sadd.s32 4294967295, %s480_s18   ;;  %s357_s20 = sadd.s32 4294967294, %s480_s18   ;;  %s480_s18 = sphi %s516_s18, %s629_s18   ;;  %s476_s17 = sphi %s514_s17, %s628_s17   ;;  %s472_s16 = sphi %s512_s16, %s627_s16   ;;  %s468_s15 = sphi %s510_s15, %s626_s15  }
   0x4   : > { %s535_s21 = sadd.s32 1, %s480_s18   ;;  %s113_s22 = sadd.s32 1, %s476_s17 }
   0x5   : > { %s110_s23 = ssub.s32 %s480_s18, %s535_s21  ;;  %p123_p0 = scmp.ne.s32.totalorder %s476_s17, %s472_s16 }
   0x6   : > { %p111_p1 = scmp.eq.s32.totalorder %s110_s23, 0  ;;  %p124_p2 = scmp.eq.s32.totalorder %s531_s19, 1 }
   0x7   : > { %p129_p3 = scmp.ne.s32.totalorder %s472_s16, %s468_s15  ;;  %p130_p4 = scmp.eq.s32.totalorder %s357_s20, 1 }
   0x8   : > { %s546_s24 = scalar_select %p111_p1, %s476_s17, %s113_s22  }
   0x9   : > { %p548_p5 = por %p124_p2, %p123_p0  ;;  %p552_p6 = por %p130_p4, %p129_p3 }
   0xa   : > { %p360_p7 = scmp.ge.s32.totalorder %s480_s18, 1  ;;  %p164_p8 = scmp.lt.s32.totalorder %s480_s18, 3 }
   0xc   : > { %p165_p9 = pnand %p360_p7, %p164_p8 }
   0xd   : > { %v194_v0 = vld [vmem:[%s620_s1] sm:$0xf] (!%p165_p9)  ;;  %vm206_vm0 = vcmask (!%p165_p9), 1043456   ;;  %p189_p10 = scmp.lt.s32.totalorder (!%p165_p9), %s531_s19, 1  ;;  %v482_v1 = vmov (!%p165_p9), 0.0   ;;  %vm483_vm1 = vmmov (!%p165_p9), 0  }
   0xe   : > { %168 = sbr.rel (%p165_p9) target bundleno = 256 (0x100), region = 36  ;;  %372 = vmatprep.subr.mxu0 (!%p165_p9), %v482_v1  ;;  %374 = vmatprep.mubr.msk.f32.mxu0 (!%p165_p9), %vm483_vm1, %v482_v1  ;;  %vm202_vm2 = vcmask (!%p165_p9), 31744   ;;  %s186_s8 = sand.u32 (!%p165_p9), 1, %s472_s16   ;;  %v363_v3 = vld [vmem:[%s621_s2] ss:$0 sm:$0xff] (!%p165_p9)  ;;  %vm282_vm3 = vcmask (!%p165_p9), 261120  }
   0xf   : > { %373 = vmatpush3.msk.msra.mxu0 (!%p165_p9), %vm206_vm0, %v194_v0  ;;  %s361_s9 = sshll.u32 (!%p165_p9), %s186_s8, 3  ;;  %v280_v5 = vld [vmem:[%s622_s3] sm:$0xff] (!%p165_p9)  ;;  %s367_s14 = sshll.u32 (!%p165_p9), %s531_s19, 7 }
  0x10   : > { %s188_s20 = scalar_lea.vmem (!%p165_p9), [#allocation2], %s361_s9  ;;  %s577_s28 = scalar_lea.hbm (!%p165_p9), %s623_s4, %s367_s14 }
  0x11   : > { %s298_s22 = sshll.u32 (!%p165_p9), %s188_s20, 4  ;;  %s579_s22 = int_to_ptr.vmem [resolvable:$true] %s298_s22 }
  0x15   : > { %s190_s29 = scalar_select %p189_p10, %s531_s19, 1 }
  0x16   : > { %s484_s19 = smov [#allocation2]  }
  0x17   : > { %s362_s30 = sshll.u32 %s190_s29, 3  ;;  %s285_s29 = scalar_lea.sflag [#allocation3], %s186_s8 }
  0x18   : > { %s192_s7 = scalar_lea.vmem %s619_s0, %s362_s30  ;;  %s418_s30 = scalar_lea.vmem %s579_s22, 128 }
  0x19   : > { %v193_v2 = vld [vmem:[%s192_s7] sm:$0xff]  ;;  %p419_p11 = scmp.ne.s32.totalorder %s579_s22, %s418_s30  ;;  %s422_s5 = sshll.u32 %s484_s19, 4  ;;  %s423_s5 = int_to_ptr.vmem [resolvable:$false] %s422_s5 }
  0x1a   : > { %375 = vmatmul.mubr.msk.f32.vlgmr.msra.gmra.mrb[0].mxu0 %vm202_vm2, %v193_v2  ;;  %s424_s6 = scalar_lea.vmem %s423_s5, 256  ;;  %p425_p0 = scmp.lt.s32.totalorder %s579_s22, %s423_s5 }
  0x1b   : > { %p420_p12 = pnand %p419_p11, %p548_p5  ;;  %p426_p1 = scmp.lt.s32.totalorder %s424_s6, %s418_s30 }
  0x1d   : > { %p421_p13 = pneg %p420_p12  ;;  %p427_p2 = por %p426_p1, %p425_p0 }
  0x1f   : > { %p428_p3 = pnand %p427_p2, %p421_p13 }
  0xed   : > { %v276_v4 = vpop.f32.mrb[0].mxu0 }
  0xee   : > { %v277_v6 = vadd.f32 %v363_v3, %v276_v4  ;;  %v376_v7 = vpop.f32.mrb[1].mxu0 }
  0xf0   : > { %v281_v8 = vadd.f32 %v280_v5, %v277_v6 }
  0xf2   : > { %283 = vst.msk [vmem:[%s188_s20] sm:$0xff] %vm282_vm3, %v281_v8 }
  0xf3   : > { %431 = shalt.err (!%p428_p3)
}
  0xf4   : > { %s432_s7 = scalar_lea.hbm %s577_s28, 128  ;;  %s436_s10 = scalar_lea.hbm %s623_s4, 256 }
  0xf5   : > { %p433_p4 = scmp.ne.s32.totalorder %s577_s28, %s432_s7  ;;  %p437_p9 = scmp.lt.u32.totalorder %s577_s28, %s623_s4 }
  0xf6   : > { %p438_p10 = scmp.lt.u32.totalorder %s436_s10, %s432_s7  ;;  %p440_p12 = scmp.lt.u32.totalorder %s432_s7, %s577_s28 }
  0xf7   : > { %p434_p7 = pnand %p433_p4, %p548_p5 }
  0xf8   : > { %p439_p11 = por %p438_p10, %p437_p9 }
  0xf9   : > { %p435_p8 = pneg %p434_p7 }
  0xfa   : > { %p441_p13 = por %p440_p12, %p439_p11 }
  0xfc   : > { %p442_p0 = pnand %p441_p13, %p435_p8 }
  0xfe   : > { %445 = shalt.err (!%p442_p0)
}
  0xff   : > { %377 = dma.vmem_to_hbm [thread:$0]  (%p548_p5), %s579_s22, 128, %s577_s28, %s285_s29  }
 0x100 PF: > { %p383_p1 = scmp.ge.s32.totalorder %s480_s18, 2  ;;  %s310_s13 = sand.u32 1, %s468_s15  }
 0x101   : > { %s311_s14 = scalar_lea.sflag [#allocation3], %s310_s13 }
 0x102   : > { %p380_p2 = pnand %p383_p1, %p552_p6 }
 0x104   : > { %463 = dma.done.wait (!%p380_p2), %s311_s14, 128  }
 0x105   : > { %465 = vsyncadd (!%p380_p2), %s311_s14, 4294967168  ;;  %p14_p3 = scmp.ge.s32.totalorder %s535_s21, 4   ;;  %s626_s15 = smov %s472_s16 }
 0x106   : > { %s627_s16 = smov %s476_s17  ;;  %s628_s17 = smov %s546_s24 }
 0x107   : > { %s629_s18 = smov %s535_s21  ;;  %16 = sbr.rel (!%p14_p3) target bundleno = 3 (0x3), region = 71 }
 0x10e   :  { %316 = vsyncpa [#allocation3], 1 }
 0x10f   :  { %318 = vsyncpa [#allocation3 + $0x1], 1 }

</bundles_post_ra>
